<compile_context>
chip_gen: v5e
topology: v5e:2x2
jax: 0.10.0
libtpu: 0.0.40
codegen_flags: <defaults>
</compile_context>

<pallas_src>
import functools

import jax
import jax.numpy as jnp
from jax.experimental import pallas as pl
from jax.experimental.pallas import tpu as pltpu


# --------------------------------------------------------------------------
# Small helpers (trace-time Python, no runtime cost).
# --------------------------------------------------------------------------
def _vmem_budget_bytes():
    # ~75% of physical VMEM (128 MiB on v5e/v6e, 64 MiB per TensorCore on
    # v7x).  Fall back to the v7x-safe value if the query is unavailable.
    try:
        cap = int(pltpu.get_tpu_info().vmem_capacity_bytes)
    except Exception:  # defensive: keep the wrapper usable everywhere
        cap = 64 << 20
    return (cap * 3) // 4


def _prefers_low_precision_scale():
    # v6e/v7x have bf16 VALUs, so the dominant elementwise gating multiply is
    # cheaper in the input dtype; v5e and older would emulate it -> keep f32.
    try:
        kind = jax.devices()[0].device_kind.lower()
    except Exception:
        return False
    return not any(t in kind for t in ("v2", "v3", "v4", "v5"))


def _largest_divisor_at_most(n, cap):
    cap = max(1, min(n, cap))
    best = 1
    for d in range(1, cap + 1):
        if n % d == 0:
            best = d
    return best


# --------------------------------------------------------------------------
# Kernels.
# --------------------------------------------------------------------------
def _se_fused_kernel(x_ref, w1t_ref, b1_ref, w2t_ref, b2_ref, o_ref, *,
                     inv_hw, compute_dtype, use_mxu):
    """Fused SE forward for a (bb, c, hw) block: pool -> FC -> FC -> scale."""
    # Squeeze: global average pool over the spatial (lane) axis -> (bb, c).
    pooled = jnp.sum(x_ref[...].astype(jnp.float32), axis=-1) * inv_hw

    # Excitation: two tiny fully-connected (1x1 conv) layers in f32.
    if use_mxu:
        hidden = jnp.dot(pooled, w1t_ref[...],
                         preferred_element_type=jnp.float32) + b1_ref[...]
        hidden = jnp.maximum(hidden, 0.0)
        gate = jax.nn.sigmoid(
            jnp.dot(hidden, w2t_ref[...],
                    preferred_element_type=jnp.float32) + b2_ref[...])
    else:
        # Exact-f32 broadcast-multiply-sum on the VPU/XLU: the reduction dims
        # are far too small for the MXU to matter, and this keeps full f32
        # accuracy for the tiny FCs.
        hidden = jnp.sum(pooled[:, :, None] * w1t_ref[...][None, :, :],
                         axis=1) + b1_ref[...]
        hidden = jnp.maximum(hidden, 0.0)
        gate = jax.nn.sigmoid(
            jnp.sum(hidden[:, :, None] * w2t_ref[...][None, :, :],
                    axis=1) + b2_ref[...])

    # Scale: re-read x from VMEM (cheap, 3 vld slots/cycle) instead of keeping
    # a full f32 copy live across the FC layers; multiply in compute_dtype so
    # bf16 inputs stay bf16 on v6e/v7x.
    gate = gate.astype(compute_dtype)[:, :, None]                 # (bb, c, 1)
    o_ref[...] = (x_ref[...].astype(compute_dtype) * gate).astype(o_ref.dtype)


def _se_pool_kernel(x_ref, sums_ref, *, hw, hw_tile, needs_mask):
    """Pass 1 of the fallback: accumulate spatial sums over an HW-split grid."""
    j = pl.program_id(1)

    @pl.when(j == 0)
    def _init():
        sums_ref[...] = jnp.zeros_like(sums_ref)

    x = x_ref[...].astype(jnp.float32)
    if needs_mask:
        # Last spatial block may extend past hw; OOB lanes are unspecified, so
        # select them to zero before reducing.
        lane = jax.lax.broadcasted_iota(jnp.int32, x.shape, x.ndim - 1)
        x = jnp.where(j * hw_tile + lane < hw, x, 0.0)
    sums_ref[...] += jnp.sum(x, axis=-1, keepdims=True)


def _se_scale_kernel(x_ref, gate_ref, o_ref, *, compute_dtype):
    """Pass 2 of the fallback: out = x * gate over an HW-split grid."""
    gate = gate_ref[...].astype(compute_dtype)                    # (bb, c, 1)
    o_ref[...] = (x_ref[...].astype(compute_dtype) * gate).astype(o_ref.dtype)


# --------------------------------------------------------------------------
# Wrapper.
# --------------------------------------------------------------------------
def se_block(x, w1, b1, w2, b2, *, force_two_pass=False):
    """SeBlock forward.

    x : (b, c, h, w)  NCHW input.
    w1: (c//r, c)     FC1 weight (Conv2d(c, c//r, 1).weight squeezed).
    b1: (c//r,)       FC1 bias.
    w2: (c, c//r)     FC2 weight (Conv2d(c//r, c, 1).weight squeezed).
    b2: (c,)          FC2 bias.
    """
    b, c, h, w = x.shape
    cr = w1.shape[0]
    hw = h * w
    itemsize = jnp.dtype(x.dtype).itemsize
    per_image_bytes = c * hw * itemsize
    total_bytes = b * per_image_bytes
    inv_hw = 1.0 / float(hw)

    budget = _vmem_budget_bytes()
    low_precision = itemsize < 4 and _prefers_low_precision_scale()
    compute_dtype = x.dtype if low_precision else jnp.float32

    # No padding / slicing of x: BlockSpecs use the full (c, hw) extents, so
    # there are no extra HBM passes outside the kernels.
    x3 = x.reshape(b, c, hw)

    # Weight prep (tiny).  NOTE: when this wrapper is jitted together with the
    # surrounding model, XLA constant-folds / hoists these casts & transposes.
    w1t = w1.astype(jnp.float32).T            # (c, cr)
    b1k = b1.astype(jnp.float32).reshape(1, cr)
    w2t = w2.astype(jnp.float32).T            # (cr, c)
    b2k = b2.astype(jnp.float32).reshape(1, c)

    # ---------------- single-pass fused path sizing ------------------------
    target_block = 4 << 20                    # ~2-8 MiB blocks hit HBM roofline
    max_rows = max(1, target_block // max(per_image_bytes, 1))
    if b >= 2:
        # Keep >= 2 grid steps so "parallel" can shard across v7x's two TCs.
        max_rows = min(max_rows, b // 2)
    bb = _largest_divisor_at_most(b, max_rows)
    n_batch_blocks = b // bb
    block_bytes = bb * per_image_bytes
    f32_temp = bb * c * hw * 4 if itemsize < 4 else 0   # pool-reduction upcast
    weight_bytes = 4 * (2 * c * cr + c + cr)
    fused_need = 4 * block_bytes + f32_temp + 2 * weight_bytes + (2 << 20)

    use_two_pass = (
        force_two_pass
        or fused_need > budget
        # Single grid step would leave one v7x TensorCore idle; for big images
        # the HW-split two-pass path (one extra read of x) is still faster.
        or (n_batch_blocks < 2 and total_bytes >= (8 << 20) and hw > 256)
    )

    if not use_two_pass:
        use_mxu = (c * cr) > 16384            # large FCs -> MXU; tiny -> VPU
        kernel = functools.partial(_se_fused_kernel, inv_hw=inv_hw,
                                   compute_dtype=compute_dtype, use_mxu=use_mxu)
        cost = pl.CostEstimate(
            flops=int(2 * b * c * hw + 4 * b * c * cr),
            transcendentals=int(b * c),
            bytes_accessed=int(2 * total_bytes),
        )
        out3 = pl.pallas_call(
            kernel,
            out_shape=jax.ShapeDtypeStruct((b, c, hw), x.dtype),
            grid_spec=pltpu.PrefetchScalarGridSpec(
                num_scalar_prefetch=0,
                grid=(n_batch_blocks,),
                in_specs=[
                    pl.BlockSpec((bb, c, hw), lambda i: (i, 0, 0)),   # x
                    pl.BlockSpec((c, cr), lambda i: (0, 0)),          # W1^T
                    pl.BlockSpec((1, cr), lambda i: (0, 0)),          # b1
                    pl.BlockSpec((cr, c), lambda i: (0, 0)),          # W2^T
                    pl.BlockSpec((1, c), lambda i: (0, 0)),           # b2
                ],
                out_specs=pl.BlockSpec((bb, c, hw), lambda i: (i, 0, 0)),
            ),
            compiler_params=pltpu.CompilerParams(
                dimension_semantics=("parallel",),
                vmem_limit_bytes=int(min(max(fused_need, 16 << 20), budget)),
            ),
            cost_estimate=cost,
        )(x3, w1t, b1k, w2t, b2k)
        return out3.reshape(b, c, h, w)

    # ---------------- two-pass fallback -------------------------------------
    # Pass 1: pooled sums over an HW-split grid (accumulator output block).
    # FC layers on the tiny (b, c) pooled tensor in plain XLA.
    # Pass 2: out = x * gate over the same HW-split grid.
    target2 = 2 << 20
    col_bytes = c * 128 * itemsize            # one 128-lane column per image
    bb2 = _largest_divisor_at_most(b, max(1, target2 // max(col_bytes, 1)))
    if hw <= 128:
        hw_tile = hw                          # full extent is always legal
    else:
        cols = max(1, min(hw // 128, target2 // max(bb2 * col_bytes, 1)))
        hw_tile = 128 * cols
    n_hw = pl.cdiv(hw, hw_tile)
    needs_mask = (hw % hw_tile) != 0
    block2 = bb2 * c * hw_tile * itemsize
    two_pass_need = 4 * block2 + bb2 * c * hw_tile * 4 + 4 * b * c * 4 + (2 << 20)
    vmem2 = int(min(max(two_pass_need, 16 << 20), budget))

    pool_kernel = functools.partial(_se_pool_kernel, hw=hw, hw_tile=hw_tile,
                                    needs_mask=needs_mask)
    sums = pl.pallas_call(
        pool_kernel,
        out_shape=jax.ShapeDtypeStruct((b, c, 1), jnp.float32),
        grid_spec=pltpu.PrefetchScalarGridSpec(
            num_scalar_prefetch=0,
            grid=(b // bb2, n_hw),
            in_specs=[pl.BlockSpec((bb2, c, hw_tile), lambda i, j: (i, 0, j))],
            out_specs=pl.BlockSpec((bb2, c, 1), lambda i, j: (i, 0, 0)),
        ),
        compiler_params=pltpu.CompilerParams(
            dimension_semantics=("parallel", "arbitrary"),
            vmem_limit_bytes=vmem2,
        ),
        cost_estimate=pl.CostEstimate(
            flops=int(b * c * hw), transcendentals=0,
            bytes_accessed=int(total_bytes + b * c * 4)),
    )(x3)

    pooled = sums[:, :, 0] * inv_hw                                     # (b, c)
    hidden = jnp.maximum(
        jnp.dot(pooled, w1t, precision=jax.lax.Precision.HIGHEST) + b1k, 0.0)
    gate = jax.nn.sigmoid(
        jnp.dot(hidden, w2t, precision=jax.lax.Precision.HIGHEST) + b2k)
    gate3 = gate.reshape(b, c, 1)                                       # f32

    scale_kernel = functools.partial(_se_scale_kernel,
                                     compute_dtype=compute_dtype)
    out3 = pl.pallas_call(
        scale_kernel,
        out_shape=jax.ShapeDtypeStruct((b, c, hw), x.dtype),
        grid_spec=pltpu.PrefetchScalarGridSpec(
            num_scalar_prefetch=0,
            grid=(b // bb2, n_hw),
            in_specs=[pl.BlockSpec((bb2, c, hw_tile), lambda i, j: (i, 0, j)),
                      pl.BlockSpec((bb2, c, 1), lambda i, j: (i, 0, 0))],
            out_specs=pl.BlockSpec((bb2, c, hw_tile), lambda i, j: (i, 0, j)),
        ),
        compiler_params=pltpu.CompilerParams(
            dimension_semantics=("parallel", "parallel"),
            vmem_limit_bytes=vmem2,
        ),
        cost_estimate=pl.CostEstimate(
            flops=int(b * c * hw), transcendentals=0,
            bytes_accessed=int(2 * total_bytes)),
    )(x3, gate3)
    return out3.reshape(b, c, h, w)


# --------------------------------------------------------------------------
# Pure-JAX reference (mirrors the PyTorch SeBlock forward in f32).
# --------------------------------------------------------------------------
def _se_ref(x, w1, b1, w2, b2):
    xf = x.astype(jnp.float32)
    pooled = jnp.mean(xf, axis=(2, 3))                                   # (B, C)
    hidden = jnp.maximum(
        jnp.dot(pooled, w1.astype(jnp.float32).T,
                precision=jax.lax.Precision.HIGHEST) + b1.astype(jnp.float32),
        0.0)
    gate = jax.nn.sigmoid(
        jnp.dot(hidden, w2.astype(jnp.float32).T,
                precision=jax.lax.Precision.HIGHEST) + b2.astype(jnp.float32))
    return (xf * gate[:, :, None, None]).astype(x.dtype)


if __name__ == "__main__":
    key = jax.random.PRNGKey(0)
    k1, k2, k3, k4, k5, k6 = jax.random.split(key, 6)

    b, c, h, w = 2, 8, 16, 16
    reduction = 4
    cr = c // reduction

    x = jax.random.normal(k1, (b, c, h, w), dtype=jnp.float32)
    w1 = jax.random.normal(k2, (cr, c), dtype=jnp.float32) * 0.5
    b1 = jax.random.normal(k3, (cr,), dtype=jnp.float32) * 0.1
    w2 = jax.random.normal(k4, (c, cr), dtype=jnp.float32) * 0.5
    b2 = jax.random.normal(k5, (c,), dtype=jnp.float32) * 0.1

    # Fused single-pass path.
    out = jax.block_until_ready(se_block(x, w1, b1, w2, b2))
    ref = _se_ref(x, w1, b1, w2, b2)
    assert out.shape == x.shape and out.dtype == x.dtype
    assert jnp.allclose(out, ref, atol=1e-4, rtol=1e-4), "fused path mismatch"

    # Two-pass fallback path, including the masked ragged spatial tail
    # (h*w = 160 is not a multiple of 128) and multi-step accumulation.
    x2 = jax.random.normal(k6, (b, c, 16, 10), dtype=jnp.float32)
    out2 = jax.block_until_ready(
        se_block(x2, w1, b1, w2, b2, force_two_pass=True))
    ref2 = _se_ref(x2, w1, b1, w2, b2)
    assert out2.shape == x2.shape and out2.dtype == x2.dtype
    assert jnp.allclose(out2, ref2, atol=1e-4, rtol=1e-4), "two-pass mismatch"

    print("KERNEL_OK")
</pallas_src>

<mosaic_0001>
module attributes {stable_mosaic.version = 11 : i64} {
  func.func @_se_fused_kernel(%arg0: i32, %arg1: memref<1x8x256xf32, #tpu.memory_space<vmem>>, %arg2: memref<8x2xf32, #tpu.memory_space<vmem>>, %arg3: memref<1x2xf32, #tpu.memory_space<vmem>>, %arg4: memref<2x8xf32, #tpu.memory_space<vmem>>, %arg5: memref<1x8xf32, #tpu.memory_space<vmem>>, %arg6: memref<1x8x256xf32, #tpu.memory_space<vmem>>) attributes {dimension_semantics = [#tpu.dimension_semantics<parallel>], iteration_bounds = array<i64: 2>, scalar_prefetch = 0 : i64, scratch_operands = 0 : i64, tpu.core_type = #tpu.core_type<tc>, window_params = [{transform_indices = @transform_0, window_bounds = array<i64: 1, 8, 256>}, {pipeline_mode = #tpu.pipeline_mode<synchronous>, transform_indices = @transform_1, window_bounds = array<i64: 8, 2>}, {pipeline_mode = #tpu.pipeline_mode<synchronous>, transform_indices = @transform_2, window_bounds = array<i64: 1, 2>}, {pipeline_mode = #tpu.pipeline_mode<synchronous>, transform_indices = @transform_3, window_bounds = array<i64: 2, 8>}, {pipeline_mode = #tpu.pipeline_mode<synchronous>, transform_indices = @transform_4, window_bounds = array<i64: 1, 8>}, {transform_indices = @transform_5, window_bounds = array<i64: 1, 8, 256>}]} {
    %c0 = arith.constant 0 : index
    %c0_0 = arith.constant 0 : index
    %c0_1 = arith.constant 0 : index
    %0 = vector.load %arg1[%c0, %c0_0, %c0_1] : memref<1x8x256xf32, #tpu.memory_space<vmem>>, vector<1x8x256xf32>
    %cst = arith.constant dense<0.000000e+00> : vector<1x8xf32>
    %1 = vector.multi_reduction <add>, %0, %cst [2] : vector<1x8x256xf32> to vector<1x8xf32>
    %cst_2 = arith.constant 3.906250e-03 : f32
    %2 = vector.broadcast %cst_2 : f32 to vector<1x8xf32>
    %3 = arith.mulf %1, %2 : vector<1x8xf32>
    %4 = vector.shape_cast %3 : vector<1x8xf32> to vector<1x8x1xf32>
    %c0_3 = arith.constant 0 : index
    %c0_4 = arith.constant 0 : index
    %5 = vector.load %arg2[%c0_3, %c0_4] : memref<8x2xf32, #tpu.memory_space<vmem>>, vector<8x2xf32>
    %6 = vector.shape_cast %5 : vector<8x2xf32> to vector<1x8x2xf32>
    %7 = vector.broadcast %4 : vector<1x8x1xf32> to vector<1x8x2xf32>
    %8 = arith.mulf %7, %6 : vector<1x8x2xf32>
    %cst_5 = arith.constant dense<0.000000e+00> : vector<1x2xf32>
    %9 = vector.multi_reduction <add>, %8, %cst_5 [1] : vector<1x8x2xf32> to vector<1x2xf32>
    %c0_6 = arith.constant 0 : index
    %c0_7 = arith.constant 0 : index
    %10 = vector.load %arg3[%c0_6, %c0_7] : memref<1x2xf32, #tpu.memory_space<vmem>>, vector<1x2xf32>
    %11 = arith.addf %9, %10 : vector<1x2xf32>
    %cst_8 = arith.constant 0.000000e+00 : f32
    %12 = vector.broadcast %cst_8 : f32 to vector<1x2xf32>
    %13 = arith.maximumf %11, %12 : vector<1x2xf32>
    %14 = vector.shape_cast %13 : vector<1x2xf32> to vector<1x2x1xf32>
    %c0_9 = arith.constant 0 : index
    %c0_10 = arith.constant 0 : index
    %15 = vector.load %arg4[%c0_9, %c0_10] : memref<2x8xf32, #tpu.memory_space<vmem>>, vector<2x8xf32>
    %16 = vector.shape_cast %15 : vector<2x8xf32> to vector<1x2x8xf32>
    %17 = vector.broadcast %14 : vector<1x2x1xf32> to vector<1x2x8xf32>
    %18 = arith.mulf %17, %16 : vector<1x2x8xf32>
    %cst_11 = arith.constant dense<0.000000e+00> : vector<1x8xf32>
    %19 = vector.multi_reduction <add>, %18, %cst_11 [1] : vector<1x2x8xf32> to vector<1x8xf32>
    %c0_12 = arith.constant 0 : index
    %c0_13 = arith.constant 0 : index
    %20 = vector.load %arg5[%c0_12, %c0_13] : memref<1x8xf32, #tpu.memory_space<vmem>>, vector<1x8xf32>
    %21 = arith.addf %19, %20 : vector<1x8xf32>
    %22 = arith.negf %21 : vector<1x8xf32>
    %23 = math.exp %22 : vector<1x8xf32>
    %cst_14 = arith.constant 1.000000e+00 : f32
    %24 = vector.broadcast %cst_14 : f32 to vector<1x8xf32>
    %25 = arith.addf %24, %23 : vector<1x8xf32>
    %26 = arith.divf %24, %25 : vector<1x8xf32>
    %27 = vector.shape_cast %26 : vector<1x8xf32> to vector<1x8x1xf32>
    %c0_15 = arith.constant 0 : index
    %c0_16 = arith.constant 0 : index
    %c0_17 = arith.constant 0 : index
    %28 = vector.load %arg1[%c0_15, %c0_16, %c0_17] : memref<1x8x256xf32, #tpu.memory_space<vmem>>, vector<1x8x256xf32>
    %29 = vector.broadcast %27 : vector<1x8x1xf32> to vector<1x8x256xf32>
    %30 = arith.mulf %28, %29 : vector<1x8x256xf32>
    %c0_18 = arith.constant 0 : index
    %c0_19 = arith.constant 0 : index
    %c0_20 = arith.constant 0 : index
    %31 = vector.load %arg6[%c0_18, %c0_19, %c0_20] : memref<1x8x256xf32, #tpu.memory_space<vmem>>, vector<1x8x256xf32>
    tpu.vector_store %arg6[%c0_18, %c0_19, %c0_20], %30 {strides = array<i32>} : memref<1x8x256xf32, #tpu.memory_space<vmem>>, vector<1x8x256xf32>,
    return
  }
  func.func @transform_0(%arg0: i32) -> (i32, i32, i32) {
    %c0_i32 = arith.constant 0 : i32
    %c0_i32_0 = arith.constant 0 : i32
    %c0_i32_1 = arith.constant 0 : i32
    return %arg0, %c0_i32, %c0_i32_0 : i32, i32, i32
  }
  func.func @transform_1(%arg0: i32) -> (i32, i32) {
    %c0_i32 = arith.constant 0 : i32
    %c0_i32_0 = arith.constant 0 : i32
    %c0_i32_1 = arith.constant 0 : i32
    return %c0_i32, %c0_i32_0 : i32, i32
  }
  func.func @transform_2(%arg0: i32) -> (i32, i32) {
    %c0_i32 = arith.constant 0 : i32
    %c0_i32_0 = arith.constant 0 : i32
    %c0_i32_1 = arith.constant 0 : i32
    return %c0_i32, %c0_i32_0 : i32, i32
  }
  func.func @transform_3(%arg0: i32) -> (i32, i32) {
    %c0_i32 = arith.constant 0 : i32
    %c0_i32_0 = arith.constant 0 : i32
    %c0_i32_1 = arith.constant 0 : i32
    return %c0_i32, %c0_i32_0 : i32, i32
  }
  func.func @transform_4(%arg0: i32) -> (i32, i32) {
    %c0_i32 = arith.constant 0 : i32
    %c0_i32_0 = arith.constant 0 : i32
    %c0_i32_1 = arith.constant 0 : i32
    return %c0_i32, %c0_i32_0 : i32, i32
  }
  func.func @transform_5(%arg0: i32) -> (i32, i32, i32) {
    %c0_i32 = arith.constant 0 : i32
    %c0_i32_0 = arith.constant 0 : i32
    %c0_i32_1 = arith.constant 0 : i32
    return %arg0, %c0_i32, %c0_i32_0 : i32, i32, i32
  }
}

</mosaic_0001>

<bundles_post_ra>
// kernel: tpu_custom_call.1
= control target key start
LH: loop header
LB: loop body
LE: loop exit
PB: predicated region body
PF: predicated region fallthrough
CT: control target
= control target key end

     0   :  { %10 = vsyncpa [#allocation3], 0  ;;  %s746_s0 = inlined_call_operand.hbm [shape: f32[2,8,256], index: 0, kind: input, shape index: {}]   ;;  %s747_s1 = inlined_call_operand.vmem [shape: f32[8,2], index: 1, kind: input, shape index: {}]   ;;  %s748_s2 = inlined_call_operand.vmem [shape: f32[1,2], index: 2, kind: input, shape index: {}]   ;;  %s749_s3 = inlined_call_operand.vmem [shape: f32[2,8], index: 3, kind: input, shape index: {}]   ;;  %s750_s4 = inlined_call_operand.vmem [shape: f32[1,8], index: 4, kind: input, shape index: {}]   ;;  %s751_s5 = inlined_call_operand.hbm [shape: f32[2,8,256], index: 5, kind: output, shape index: {}]  }
   0x1   :  { %12 = vsyncpa [#allocation3 + $0x1], 0 }
   0x2   :  { %13 = vsyncpa [#allocation4], 0 }
   0x3   :  { %15 = vsyncpa [#allocation4 + $0x1], 0  ;;  %s595_s18 = smov 0   ;;  %s597_s19 = smov 0  }
   0x4   :  { %s599_s20 = smov 0   ;;  %s601_s21 = smov 0  }
   0x5 LB: > { %s616_s22 = sadd.s32 4294967295, %s563_s21   ;;  %s398_s23 = sadd.s32 4294967294, %s563_s21   ;;  %s563_s21 = sphi %s601_s21, %s761_s21   ;;  %s559_s20 = sphi %s599_s20, %s760_s20   ;;  %s555_s19 = sphi %s597_s19, %s759_s19   ;;  %s551_s18 = sphi %s595_s18, %s758_s18  }
   0x6   : > { %s620_s24 = sadd.s32 1, %s563_s21   ;;  %s28_s25 = sadd.s32 1, %s559_s20 }
   0x7   : > { %s25_s26 = ssub.s32 %s563_s21, %s620_s24  ;;  %p35_p0 = scmp.ne.s32.totalorder %s559_s20, %s555_s19 }
   0x8   : > { %p26_p1 = scmp.eq.s32.totalorder %s25_s26, 0  ;;  %p36_p2 = scmp.eq.s32.totalorder %s563_s21, 0 }
   0x9   : > { %p41_p3 = scmp.ne.s32.totalorder %s555_s19, %s551_s18  ;;  %p42_p4 = scmp.eq.s32.totalorder %s616_s22, 0 }
   0xa   : > { %s632_s27 = scalar_select %p26_p1, %s559_s20, %s28_s25  }
   0xb   : > { %p634_p5 = por %p36_p2, %p35_p0  ;;  %p638_p6 = por %p42_p4, %p41_p3 }
   0xc   : > { %p149_p7 = scmp.eq.s32.totalorder %s616_s22, 1  ;;  %p155_p8 = scmp.eq.s32.totalorder %s398_s23, 1 }
   0xd   : > { %p427_p10 = scmp.lt.s32.totalorder %s563_s21, 2  ;;  %s187_s7 = sand.u32 1, %s559_s20  }
   0xe   : > { %p645_p11 = por %p149_p7, %p35_p0  ;;  %p649_p12 = por %p155_p8, %p41_p3 }
   0xf   : > { %s413_s8 = sshll.u32 %s563_s21, 4  ;;  %s401_s9 = sshll.u32 %s187_s7, 4 }
  0x10   : > { %s196_s12 = scalar_lea.hbm %s746_s0, %s413_s8  ;;  %s191_s14 = scalar_lea.vmem [#allocation2], %s401_s9 }
  0x11   : > { %s198_s13 = sshll.u32 %s196_s12, 4  ;;  %s200_s15 = sshll.u32 %s191_s14, 4  ;;  %s199_s13 = int_to_ptr.hbm [resolvable:$true] %s198_s13  ;;  %s201_s15 = int_to_ptr.vmem [resolvable:$true] %s200_s15 }
  0x12   : > { %p660_p13 = pnand %p427_p10, %p634_p5  ;;  %p404_p0 = scmp.ge.s32.totalorder %s563_s21, 1 }
  0x13   : > { %p205_p1 = scmp.lt.s32.totalorder %s563_s21, 3  ;;  %s188_s17 = scalar_lea.sflag [#allocation3], %s187_s7 }
  0x14   : > { %s467_s23 = sshra.s32 %s199_s13, 4  ;;  %p471_p3 = pneg %p660_p13  ;;  %s468_s23 = int_to_ptr.hbm [resolvable:$true] %s467_s23 }
  0x15   : > { %s469_s25 = scalar_lea.hbm %s468_s23, 16  ;;  %s474_s28 = scalar_lea.hbm %s746_s0, 32 }
  0x16   : > { %p470_p2 = scmp.ne.s32.totalorder %s468_s23, %s469_s25  ;;  %p475_p5 = scmp.lt.s32.totalorder %s468_s23, %s746_s0 }
  0x17   : > { %p476_p8 = scmp.lt.s32.totalorder %s474_s28, %s469_s25 }
  0x18   : > { %p472_p4 = pnand %p471_p3, %p470_p2 }
  0x19   : > { %p477_p10 = por %p476_p8, %p475_p5 }
  0x1a   : > { %p473_p7 = pneg %p472_p4 }
  0x1c   : > { %p478_p9 = pnand %p477_p10, %p473_p7 }
  0x1e   : > { %481 = shalt.err (!%p478_p9)
}
  0x1f   : > { %422 = dma.hbm_to_vmem [thread:$0]  (!%p660_p13), %s199_s13, 256, %s201_s15, %s188_s17  }
  0x20   : > { %p206_p2 = pnand %p404_p0, %p205_p1 }
  0x21   : > { %s681_s7 = sand.u32 (!%p206_p2), 1, %s555_s19  }
  0x22   : > { %209 = sbr.rel (%p206_p2) target bundleno = 465 (0x1d1), region = 40  ;;  %s405_s11 = sshll.u32 (!%p206_p2), %s681_s7, 4 }
  0x23   : > { %s212_s12 = scalar_lea.sflag (!%p206_p2), [#allocation3], %s681_s7  ;;  %s215_s14 = scalar_lea.vmem (!%p206_p2), [#allocation2], %s405_s11 }
  0x27   : > { %542 = dma.done.wait (%p638_p6), %s212_s12, 256  }
  0x28   : > { %544 = vsyncadd (%p638_p6), %s212_s12, 4294967040  ;;  %v691_v0 = vld [vmem:[%s215_s14] sm:$0xff]  ;;  %v693_v1 = vld [vmem:[%s215_s14 + $0x8] sm:$0xff]  ;;  %v263_v3 = vlaneseq  ;;  %vm251_vm0 = vcmask 15360   ;;  %vm271_vm1 = vcmask 58368   ;;  %s414_s8 = sshll.u32 %s616_s22, 4 }
  0x29   : > { %v245_v2 = vadd.f32 %v693_v1, %v691_v0  ;;  %v249_v5 = vld [vmem:[%s747_s1] sm:$0xff]  ;;  %s323_s10 = scalar_lea.hbm %s751_s5, %s414_s8  ;;  %s242_s12 = scalar_lea.vmem [#allocation5], %s405_s11 }
  0x2a   : > { %v264_v4 = vshrl.u32 %v263_v3, 7  ;;  %v259_v15 = vld [vmem:[%s748_s2] sm:$0x1]  ;;  %s325_s14 = sshll.u32 %s242_s12, 4  ;;  %s327_s13 = sshll.u32 %s323_s10, 4  ;;  %s326_s14 = int_to_ptr.vmem [resolvable:$true] %s325_s14  ;;  %s328_s13 = int_to_ptr.hbm [resolvable:$true] %s327_s13 }
  0x2b   : > { %246 = vadd.xlane.f32.xlu0 %v245_v2  ;;  %v269_v20 = vld [vmem:[%s749_s3] sm:$0x3]  ;;  %s312_s15 = scalar_lea.sflag [#allocation4], %s681_s7  ;;  %s511_s22 = sshra.s32 %s328_s13, 4  ;;  %s512_s22 = int_to_ptr.hbm [resolvable:$true] %s511_s22 }
  0x2c   : > { %461 = vset.pattern.permute.xlu0 %v264_v4  ;;  %462 = vset.pattern.permute.xlu1 %v264_v4  ;;  %v279_v29 = vld [vmem:[%s750_s4] sm:$0x1]  ;;  %s513_s29 = scalar_lea.hbm %s512_s22, 16  ;;  %s517_s17 = scalar_lea.hbm %s751_s5, 32 }
  0x2d   : > { %p514_p6 = scmp.ne.s32.totalorder %s512_s22, %s513_s29  ;;  %p518_p0 = scmp.lt.s32.totalorder %s512_s22, %s751_s5 }
  0x2e   : > { %p519_p1 = scmp.lt.s32.totalorder %s517_s17, %s513_s29 }
  0x2f   : > { %p515_p9 = pnand %p514_p6, %p645_p11 }
  0x30   : > { %p520_p3 = por %p519_p1, %p518_p0 }
  0x31   : > { %p516_p13 = pneg %p515_p9 }
  0x33   : > { %p521_p4 = pnand %p520_p3, %p516_p13 }
  0x9e   : > { %v247_v6 = vpop.xlane.xlu0 %246 }
  0x9f   : > { %v248_v7 = vmul.f32 0.00390625, %v247_v6 }
  0xa1   : > { %v250_v8 = vmul.f32 %v249_v5, %v248_v7 }
  0xa3   : > { %v252_v9 = vsel %vm251_vm0, %v250_v8, 0.0 }
  0xa4   : > { %v253_v10 = vrot.slane %v252_v9, 4 }
  0xa6   : > { %v254_v11 = vadd.f32 %v253_v10, %v252_v9 }
  0xa8   : > { %v255_v12 = vrot.slane %v254_v11, 2 }
  0xaa   : > { %v256_v13 = vadd.f32 %v255_v12, %v254_v11 }
  0xac   : > { %v257_v14 = vrot.slane %v256_v13, 1 }
  0xae   : > { %v258_v16 = vadd.f32 %v257_v14, %v256_v13 }
  0xb0   : > { %v260_v17 = vadd.f32 %v259_v15, %v258_v16 }
  0xb2   : > { %v261_v18 = vmax.f32 %v260_v17, 0.0 }
  0xb4   : > { %v262_v19 = vperm.slane %v261_v18, 0 }
  0xb6   : > { %267 = vperm.xlu0 %461, %v262_v19  }
 0x128   : > { %v268_v21 = vpop.permute.xlu0 %267 }
 0x129   : > { %v270_v22 = vmul.f32 %v269_v20, %v268_v21 }
 0x12b   : > { %v272_v23 = vsel %vm271_vm1, %v270_v22, 0.0 }
 0x12c   : > { %v273_v24 = vrot.slane %v272_v23, 4 }
 0x12e   : > { %v274_v25 = vadd.f32 %v273_v24, %v272_v23 }
 0x130   : > { %v275_v26 = vrot.slane %v274_v25, 2 }
 0x132   : > { %v276_v27 = vadd.f32 %v275_v26, %v274_v25 }
 0x134   : > { %v277_v28 = vrot.slane %v276_v27, 1 }
 0x136   : > { %v278_v30 = vadd.f32 %v277_v28, %v276_v27 }
 0x138   : > { %v280_v31 = vadd.f32 %v279_v29, %v278_v30 }
 0x13a   : > { %v407_v32 = vmul.f32 -1.442695, %v280_v31 }
 0x13c   : > { %463 = vpow2.f32 %v407_v32 }
 0x142   : > { %v464_v33 = vpop.eup %463 }
 0x143   : > { %v284_v34 = vadd.f32 1.0, %v464_v33 }
 0x145   : > { %465 = vrcp.f32 %v284_v34  ;;  %v296_v38 = vand.u32 2147483648, %v284_v34  ;;  %v294_v40 = vand.u32 2147483647, %v284_v34  ;;  %vm290_vm3 = vweird.f32 %v284_v34 }
 0x147   : > { %v297_v42 = vor.u32 1.1754944e-38, %v296_v38  ;;  %vm295_vm5 = vcmp.eq.f32.partialorder %v294_v40, 8.507059e+37 }
 0x14b   : > { %v466_v35 = vpop.eup %465 }
 0x14c   : > { %v286_v36 = vmul.f32 %v466_v35, %v284_v34  ;;  %vm291_vm2 = vweird.f32 %v466_v35 }
 0x14d   : > { %vm292_vm4 = vmor %vm290_vm3, %vm291_vm2 }
 0x14e   : > { %v287_v37 = vsub.f32 1.0, %v286_v36 }
 0x150   : > { %v288_v39 = vmul.f32 %v466_v35, %v287_v37 }
 0x152   : > { %v289_v41 = vadd.f32 %v466_v35, %v288_v39 }
 0x154   : > { %v293_v43 = vsel %vm292_vm4, %v466_v35, %v289_v41 }
 0x155   : > { %v298_v44 = vsel %vm295_vm5, %v297_v42, %v293_v43 }
 0x156   : > { %v300_v45 = vperm.slane %v298_v44, 0 }
 0x158   : > { %305 = vperm.xlu1 %462, %v300_v45  }
 0x1ca   : > { %v306_v46 = vpop.permute.xlu1 %305 }
 0x1cb   : > { %v307_v47 = vmul.f32 %v306_v46, %v691_v0  ;;  %v308_v48 = vmul.f32 %v306_v46, %v693_v1 }
 0x1cd   : > { %309 = vst [vmem:[%s242_s12] sm:$0xff] %v307_v47 }
 0x1ce   : > { %310 = vst [vmem:[%s242_s12 + $0x8] sm:$0xff] %v308_v48 }
 0x1cf   : > { %524 = shalt.err (!%p521_p4)
}
 0x1d0   : > { %417 = dma.vmem_to_hbm [thread:$0]  (%p645_p11), %s326_s14, 256, %s328_s13, %s312_s15  }
 0x1d1 PF: > { %s339_s7 = sand.u32 1, %s551_s18   ;;  %p757_p7 = scmp.ge.s32.totalorder %s563_s21, 2 }
 0x1d2   : > { %s340_s26 = scalar_lea.sflag [#allocation4], %s339_s7 }
 0x1d3   : > { %p424_p5 = pnand %p757_p7, %p649_p12 }
 0x1d5   : > { %p425_p8 = pneg %p424_p5 }
 0x1d7   : > { %546 = dma.done.wait (%p425_p8), %s340_s26, 256  }
 0x1d8   : > { %548 = vsyncadd (%p425_p8), %s340_s26, 4294967040  ;;  %p18_p10 = scmp.ge.s32.totalorder %s620_s24, 4   ;;  %s758_s18 = smov %s555_s19 }
 0x1d9   : > { %s759_s19 = smov %s559_s20  ;;  %s760_s20 = smov %s632_s27 }
 0x1da   : > { %s761_s21 = smov %s620_s24  ;;  %20 = sbr.rel (!%p18_p10) target bundleno = 5 (0x5), region = 85 }
 0x1df   :  { %346 = vsyncpa [#allocation3], 1 }
 0x1e0   :  { %348 = vsyncpa [#allocation3 + $0x1], 1 }
 0x1e1   :  { %349 = vsyncpa [#allocation4], 1 }
 0x1e2   :  { %351 = vsyncpa [#allocation4 + $0x1], 1 }

</bundles_post_ra>
